<compile_context>
chip_gen: v6e
topology: v6e:2x2x1
jax: 0.10.0
libtpu: 0.0.40
codegen_flags: <defaults>
</compile_context>

<pallas_src>
import functools

import jax
import jax.numpy as jnp
from jax.experimental import pallas as pl
from jax.experimental.pallas import tpu as pltpu


HIDDEN = 50        # logical hidden width (matches nn.Linear(..., 50))
HIDDEN_PAD = 64    # zero-padded, sublane-aligned hidden width
OUT_PAD = 128      # lane-dense padded action dim for the output store


def _round_up(x, m):
    return ((x + m - 1) // m) * m


def _policy_mlp_kernel(x_ref, w1_ref, b1_ref, w2_ref, b2_ref,
                       w3_ref, b3_ref, w4_ref, b4_ref, out_ref,
                       *, discrete, action_dim, dot_dtype):
    """Fused 4-layer MLP forward for one batch tile, entirely in VMEM."""

    def dense(h, w_ref, b_ref):
        # bf16 x bf16 -> f32 accumulate on the MXU; bias add in f32 on the VPU.
        return (jnp.dot(h.astype(dot_dtype), w_ref[...],
                        preferred_element_type=jnp.float32) + b_ref[...])

    h = jnp.tanh(dense(x_ref[...], w1_ref, b1_ref))
    h = jnp.tanh(dense(h, w2_ref, b2_ref))
    h = jnp.tanh(dense(h, w3_ref, b3_ref))
    logits = dense(h, w4_ref, b4_ref)          # (tb, OUT_PAD), f32

    if discrete:
        # Mask the zero-padded action lanes out of the softmax, then do a
        # numerically-stable row softmax; divide -> EUP reciprocal * VPU mul.
        col = jax.lax.broadcasted_iota(jnp.int32, logits.shape, 1)
        logits = jnp.where(col < action_dim, logits, -1e30)
        m = jnp.max(logits, axis=-1, keepdims=True)
        e = jnp.exp(logits - m)
        denom = jnp.sum(e, axis=-1, keepdims=True)
        out_ref[...] = e * pl.reciprocal(denom, approx=True)
    else:
        out_ref[...] = logits                  # the MVN mean (padded lanes = 0)


def policy_forward(states, params, *, discrete, batch_tile=512,
                   dot_dtype=jnp.bfloat16):
    """Runs the policy MLP in a single fused Pallas kernel.

    Returns:
      discrete=True : probs (B, action_dim)                 -- Categorical params
      discrete=False: (mean (B, action_dim), cov (A, A))    -- MVN params
    """
    w1, b1, w2, b2, w3, b3, w4, b4 = (
        params["w1"], params["b1"], params["w2"], params["b2"],
        params["w3"], params["b3"], params["w4"], params["b4"])

    B, S = states.shape
    A = w4.shape[1]

    # ---- zero-pad feature dims (exact: zero rows/cols/biases contribute 0) --
    def pad_w(w, rows, cols):
        return jnp.pad(w, ((0, rows - w.shape[0]),
                           (0, cols - w.shape[1]))).astype(dot_dtype)

    def pad_b(b, n):
        return jnp.pad(b, (0, n - b.shape[0])).reshape(1, n).astype(jnp.float32)

    w1p = pad_w(w1, S, HIDDEN_PAD)
    w2p = pad_w(w2, HIDDEN_PAD, HIDDEN_PAD)
    w3p = pad_w(w3, HIDDEN_PAD, HIDDEN_PAD)
    w4p = pad_w(w4, HIDDEN_PAD, OUT_PAD)
    b1p, b2p, b3p = pad_b(b1, HIDDEN_PAD), pad_b(b2, HIDDEN_PAD), pad_b(b3, HIDDEN_PAD)
    b4p = pad_b(b4, OUT_PAD)

    # ---- batch tiling: big tiles, grid >= 2 when possible (v7x megacore) ----
    B_pad = _round_up(B, 8)
    if 8 < B_pad <= batch_tile:
        tb = _round_up((B_pad + 1) // 2, 8)     # split so grid length == 2
    else:
        tb = min(batch_tile, B_pad)
    B_pad = _round_up(B_pad, tb)
    grid = B_pad // tb

    x = states.astype(jnp.float32)
    if B_pad != B:
        x = jnp.pad(x, ((0, B_pad - B), (0, 0)))

    full = lambda shape: pl.BlockSpec(shape, lambda i: (0, 0))

    out = pl.pallas_call(
        functools.partial(_policy_mlp_kernel, discrete=discrete,
                          action_dim=A, dot_dtype=dot_dtype),
        out_shape=jax.ShapeDtypeStruct((B_pad, OUT_PAD), jnp.float32),
        grid_spec=pltpu.PrefetchScalarGridSpec(
            num_scalar_prefetch=0,
            grid=(grid,),
            in_specs=[
                pl.BlockSpec((tb, S), lambda i: (i, 0)),          # states tile
                full((S, HIDDEN_PAD)), full((1, HIDDEN_PAD)),     # layer 1
                full((HIDDEN_PAD, HIDDEN_PAD)), full((1, HIDDEN_PAD)),  # layer 2
                full((HIDDEN_PAD, HIDDEN_PAD)), full((1, HIDDEN_PAD)),  # layer 3
                full((HIDDEN_PAD, OUT_PAD)), full((1, OUT_PAD)),  # layer 4
            ],
            out_specs=pl.BlockSpec((tb, OUT_PAD), lambda i: (i, 0)),
        ),
        compiler_params=pltpu.CompilerParams(
            dimension_semantics=("parallel",)),
    )(x, w1p, b1p, w2p, b2p, w3p, b3p, w4p, b4p)

    out = out[:B, :A]

    if discrete:
        return out
    # continuous: cov = eye(A) * exp(log_std)**2   (tiny glue, plain JAX)
    std = jnp.exp(params["log_std"])
    cov = jnp.eye(A, dtype=jnp.float32) * (std ** 2)
    return out, cov


def init_params(key, state_dim, action_dim, discrete):
    """Deterministic init matching nn.Linear default (U[-1/sqrt(fan_in), +])."""
    dims = [(state_dim, HIDDEN), (HIDDEN, HIDDEN), (HIDDEN, HIDDEN),
            (HIDDEN, action_dim)]
    params = {}
    for idx, (fan_in, fan_out) in enumerate(dims, start=1):
        key, kw, kb = jax.random.split(key, 3)
        bound = 1.0 / jnp.sqrt(jnp.float32(fan_in))
        params[f"w{idx}"] = jax.random.uniform(
            kw, (fan_in, fan_out), jnp.float32, -bound, bound)
        params[f"b{idx}"] = jax.random.uniform(
            kb, (fan_out,), jnp.float32, -bound, bound)
    if not discrete:
        params["log_std"] = jnp.zeros((action_dim,), jnp.float32)
    return params


def _reference(states, params, discrete):
    h = jnp.tanh(states @ params["w1"] + params["b1"])
    h = jnp.tanh(h @ params["w2"] + params["b2"])
    h = jnp.tanh(h @ params["w3"] + params["b3"])
    logits = h @ params["w4"] + params["b4"]
    if discrete:
        return jax.nn.softmax(logits, axis=-1)
    return logits


if __name__ == "__main__":
    key = jax.random.PRNGKey(0)
    B, STATE_DIM, ACTION_DIM = 8, 16, 4

    k_states, k_params, k_states2 = jax.random.split(key, 3)
    states = jax.random.normal(k_states, (B, STATE_DIM), jnp.float32)

    # tolerances are loosened vs. a pure-f32 reference because the kernel uses
    # bf16 MXU inputs (f32 accumulate) and an approx EUP reciprocal.
    ATOL, RTOL = 2e-2, 2e-2

    # ---- discrete policy: kernel returns Categorical probs ----
    p_disc = init_params(k_params, STATE_DIM, ACTION_DIM, discrete=True)
    probs = policy_forward(states, p_disc, discrete=True)
    probs = jax.block_until_ready(probs)
    ref_probs = _reference(states, p_disc, discrete=True)
    assert probs.shape == (B, ACTION_DIM)
    assert jnp.allclose(jnp.sum(probs, axis=-1), 1.0, atol=5e-3)
    assert jnp.allclose(probs, ref_probs, atol=ATOL, rtol=RTOL)

    # ---- continuous policy: kernel returns MVN mean; cov from log_std ----
    p_cont = init_params(k_params, STATE_DIM, ACTION_DIM, discrete=False)
    mean, cov = policy_forward(states, p_cont, discrete=False)
    mean = jax.block_until_ready(mean)
    ref_mean = _reference(states, p_cont, discrete=False)
    assert mean.shape == (B, ACTION_DIM) and cov.shape == (ACTION_DIM, ACTION_DIM)
    assert jnp.allclose(mean, ref_mean, atol=ATOL, rtol=RTOL)
    assert jnp.allclose(cov, jnp.eye(ACTION_DIM), atol=1e-6)

    # ---- ragged batch path (padding + grid >= 2) ----
    states_odd = jax.random.normal(k_states2, (19, STATE_DIM), jnp.float32)
    probs_odd = jax.block_until_ready(
        policy_forward(states_odd, p_disc, discrete=True))
    ref_odd = _reference(states_odd, p_disc, discrete=True)
    assert probs_odd.shape == (19, ACTION_DIM)
    assert jnp.allclose(probs_odd, ref_odd, atol=ATOL, rtol=RTOL)

    print("KERNEL_OK")
</pallas_src>

<mosaic_0001>
module attributes {stable_mosaic.version = 11 : i64} {
  func.func @_policy_mlp_kernel(%arg0: i32, %arg1: memref<8x16xf32, #tpu.memory_space<vmem>>, %arg2: memref<16x64xbf16, #tpu.memory_space<vmem>>, %arg3: memref<1x64xf32, #tpu.memory_space<vmem>>, %arg4: memref<64x64xbf16, #tpu.memory_space<vmem>>, %arg5: memref<1x64xf32, #tpu.memory_space<vmem>>, %arg6: memref<64x64xbf16, #tpu.memory_space<vmem>>, %arg7: memref<1x64xf32, #tpu.memory_space<vmem>>, %arg8: memref<64x128xbf16, #tpu.memory_space<vmem>>, %arg9: memref<1x128xf32, #tpu.memory_space<vmem>>, %arg10: memref<8x128xf32, #tpu.memory_space<vmem>>) attributes {dimension_semantics = [#tpu.dimension_semantics<parallel>], iteration_bounds = array<i64: 1>, scalar_prefetch = 0 : i64, scratch_operands = 0 : i64, tpu.core_type = #tpu.core_type<tc>, window_params = [{transform_indices = @transform_0, window_bounds = array<i64: 8, 16>}, {pipeline_mode = #tpu.pipeline_mode<synchronous>, transform_indices = @transform_1, window_bounds = array<i64: 16, 64>}, {pipeline_mode = #tpu.pipeline_mode<synchronous>, transform_indices = @transform_2, window_bounds = array<i64: 1, 64>}, {pipeline_mode = #tpu.pipeline_mode<synchronous>, transform_indices = @transform_3, window_bounds = array<i64: 64, 64>}, {pipeline_mode = #tpu.pipeline_mode<synchronous>, transform_indices = @transform_4, window_bounds = array<i64: 1, 64>}, {pipeline_mode = #tpu.pipeline_mode<synchronous>, transform_indices = @transform_5, window_bounds = array<i64: 64, 64>}, {pipeline_mode = #tpu.pipeline_mode<synchronous>, transform_indices = @transform_6, window_bounds = array<i64: 1, 64>}, {pipeline_mode = #tpu.pipeline_mode<synchronous>, transform_indices = @transform_7, window_bounds = array<i64: 64, 128>}, {pipeline_mode = #tpu.pipeline_mode<synchronous>, transform_indices = @transform_8, window_bounds = array<i64: 1, 128>}, {transform_indices = @transform_9, window_bounds = array<i64: 8, 128>}]} {
    %c0 = arith.constant 0 : index
    %c0_0 = arith.constant 0 : index
    %0 = vector.load %arg1[%c0, %c0_0] : memref<8x16xf32, #tpu.memory_space<vmem>>, vector<8x16xf32>
    %1 = arith.truncf %0 : vector<8x16xf32> to vector<8x16xbf16>
    %c0_1 = arith.constant 0 : index
    %c0_2 = arith.constant 0 : index
    %2 = vector.load %arg2[%c0_1, %c0_2] : memref<16x64xbf16, #tpu.memory_space<vmem>>, vector<16x64xbf16>
    %cst = arith.constant dense<0.000000e+00> : vector<8x64xf32>
    %3 = tpu.matmul %1, %2, %cst {dimension_numbers = #tpu.dot_dimension_numbers<[1], [0], [0], [1], [0, 0, 1, 1], [], []>} : vector<8x16xbf16>, vector<16x64xbf16>, vector<8x64xf32> -> vector<8x64xf32>
    %c0_3 = arith.constant 0 : index
    %c0_4 = arith.constant 0 : index
    %4 = vector.load %arg3[%c0_3, %c0_4] : memref<1x64xf32, #tpu.memory_space<vmem>>, vector<1x64xf32>
    %5 = vector.broadcast %4 : vector<1x64xf32> to vector<8x64xf32>
    %6 = arith.addf %3, %5 : vector<8x64xf32>
    %7 = math.tanh %6 : vector<8x64xf32>
    %8 = arith.truncf %7 : vector<8x64xf32> to vector<8x64xbf16>
    %c0_5 = arith.constant 0 : index
    %c0_6 = arith.constant 0 : index
    %9 = vector.load %arg4[%c0_5, %c0_6] : memref<64x64xbf16, #tpu.memory_space<vmem>>, vector<64x64xbf16>
    %cst_7 = arith.constant dense<0.000000e+00> : vector<8x64xf32>
    %10 = tpu.matmul %8, %9, %cst_7 {dimension_numbers = #tpu.dot_dimension_numbers<[1], [0], [0], [1], [0, 0, 1, 1], [], []>} : vector<8x64xbf16>, vector<64x64xbf16>, vector<8x64xf32> -> vector<8x64xf32>
    %c0_8 = arith.constant 0 : index
    %c0_9 = arith.constant 0 : index
    %11 = vector.load %arg5[%c0_8, %c0_9] : memref<1x64xf32, #tpu.memory_space<vmem>>, vector<1x64xf32>
    %12 = vector.broadcast %11 : vector<1x64xf32> to vector<8x64xf32>
    %13 = arith.addf %10, %12 : vector<8x64xf32>
    %14 = math.tanh %13 : vector<8x64xf32>
    %15 = arith.truncf %14 : vector<8x64xf32> to vector<8x64xbf16>
    %c0_10 = arith.constant 0 : index
    %c0_11 = arith.constant 0 : index
    %16 = vector.load %arg6[%c0_10, %c0_11] : memref<64x64xbf16, #tpu.memory_space<vmem>>, vector<64x64xbf16>
    %cst_12 = arith.constant dense<0.000000e+00> : vector<8x64xf32>
    %17 = tpu.matmul %15, %16, %cst_12 {dimension_numbers = #tpu.dot_dimension_numbers<[1], [0], [0], [1], [0, 0, 1, 1], [], []>} : vector<8x64xbf16>, vector<64x64xbf16>, vector<8x64xf32> -> vector<8x64xf32>
    %c0_13 = arith.constant 0 : index
    %c0_14 = arith.constant 0 : index
    %18 = vector.load %arg7[%c0_13, %c0_14] : memref<1x64xf32, #tpu.memory_space<vmem>>, vector<1x64xf32>
    %19 = vector.broadcast %18 : vector<1x64xf32> to vector<8x64xf32>
    %20 = arith.addf %17, %19 : vector<8x64xf32>
    %21 = math.tanh %20 : vector<8x64xf32>
    %22 = arith.truncf %21 : vector<8x64xf32> to vector<8x64xbf16>
    %c0_15 = arith.constant 0 : index
    %c0_16 = arith.constant 0 : index
    %23 = vector.load %arg8[%c0_15, %c0_16] : memref<64x128xbf16, #tpu.memory_space<vmem>>, vector<64x128xbf16>
    %cst_17 = arith.constant dense<0.000000e+00> : vector<8x128xf32>
    %24 = tpu.matmul %22, %23, %cst_17 {dimension_numbers = #tpu.dot_dimension_numbers<[1], [0], [0], [1], [0, 0, 1, 1], [], []>} : vector<8x64xbf16>, vector<64x128xbf16>, vector<8x128xf32> -> vector<8x128xf32>
    %c0_18 = arith.constant 0 : index
    %c0_19 = arith.constant 0 : index
    %25 = vector.load %arg9[%c0_18, %c0_19] : memref<1x128xf32, #tpu.memory_space<vmem>>, vector<1x128xf32>
    %26 = vector.broadcast %25 : vector<1x128xf32> to vector<8x128xf32>
    %27 = arith.addf %24, %26 : vector<8x128xf32>
    %28 = tpu.iota {dimensions = array<i32: 1>} : vector<8x128xi32>
    %c4_i32 = arith.constant 4 : i32
    %29 = vector.broadcast %c4_i32 : i32 to vector<8x128xi32>
    %30 = arith.cmpi slt, %28, %29 : vector<8x128xi32>
    %cst_20 = arith.constant -1.000000e+30 : f32
    %31 = vector.broadcast %cst_20 : f32 to vector<8x128xf32>
    %32 = arith.select %30, %27, %31 : vector<8x128xi1>, vector<8x128xf32>
    %cst_21 = arith.constant dense<0xFF800000> : vector<8xf32>
    %33 = vector.multi_reduction <maximumf>, %32, %cst_21 [1] : vector<8x128xf32> to vector<8xf32>
    %34 = vector.shape_cast %33 : vector<8xf32> to vector<8x1xf32>
    %35 = vector.broadcast %34 : vector<8x1xf32> to vector<8x128xf32>
    %36 = arith.subf %32, %35 : vector<8x128xf32>
    %37 = math.exp %36 : vector<8x128xf32>
    %cst_22 = arith.constant dense<0.000000e+00> : vector<8xf32>
    %38 = vector.multi_reduction <add>, %37, %cst_22 [1] : vector<8x128xf32> to vector<8xf32>
    %39 = vector.shape_cast %38 : vector<8xf32> to vector<8x1xf32>
    %40 = tpu.reciprocal %39 {approx = true} : vector<8x1xf32> -> vector<8x1xf32>
    %41 = vector.broadcast %40 : vector<8x1xf32> to vector<8x128xf32>
    %42 = arith.mulf %37, %41 : vector<8x128xf32>
    %c0_23 = arith.constant 0 : index
    %c0_24 = arith.constant 0 : index
    %43 = vector.load %arg10[%c0_23, %c0_24] : memref<8x128xf32, #tpu.memory_space<vmem>>, vector<8x128xf32>
    tpu.vector_store %arg10[%c0_23, %c0_24], %42 {strides = array<i32>} : memref<8x128xf32, #tpu.memory_space<vmem>>, vector<8x128xf32>,
    return
  }
  func.func @transform_0(%arg0: i32) -> (i32, i32) {
    %c0_i32 = arith.constant 0 : i32
    %c0_i32_0 = arith.constant 0 : i32
    return %arg0, %c0_i32 : i32, i32
  }
  func.func @transform_1(%arg0: i32) -> (i32, i32) {
    %c0_i32 = arith.constant 0 : i32
    %c0_i32_0 = arith.constant 0 : i32
    %c0_i32_1 = arith.constant 0 : i32
    return %c0_i32, %c0_i32_0 : i32, i32
  }
  func.func @transform_2(%arg0: i32) -> (i32, i32) {
    %c0_i32 = arith.constant 0 : i32
    %c0_i32_0 = arith.constant 0 : i32
    %c0_i32_1 = arith.constant 0 : i32
    return %c0_i32, %c0_i32_0 : i32, i32
  }
  func.func @transform_3(%arg0: i32) -> (i32, i32) {
    %c0_i32 = arith.constant 0 : i32
    %c0_i32_0 = arith.constant 0 : i32
    %c0_i32_1 = arith.constant 0 : i32
    return %c0_i32, %c0_i32_0 : i32, i32
  }
  func.func @transform_4(%arg0: i32) -> (i32, i32) {
    %c0_i32 = arith.constant 0 : i32
    %c0_i32_0 = arith.constant 0 : i32
    %c0_i32_1 = arith.constant 0 : i32
    return %c0_i32, %c0_i32_0 : i32, i32
  }
  func.func @transform_5(%arg0: i32) -> (i32, i32) {
    %c0_i32 = arith.constant 0 : i32
    %c0_i32_0 = arith.constant 0 : i32
    %c0_i32_1 = arith.constant 0 : i32
    return %c0_i32, %c0_i32_0 : i32, i32
  }
  func.func @transform_6(%arg0: i32) -> (i32, i32) {
    %c0_i32 = arith.constant 0 : i32
    %c0_i32_0 = arith.constant 0 : i32
    %c0_i32_1 = arith.constant 0 : i32
    return %c0_i32, %c0_i32_0 : i32, i32
  }
  func.func @transform_7(%arg0: i32) -> (i32, i32) {
    %c0_i32 = arith.constant 0 : i32
    %c0_i32_0 = arith.constant 0 : i32
    %c0_i32_1 = arith.constant 0 : i32
    return %c0_i32, %c0_i32_0 : i32, i32
  }
  func.func @transform_8(%arg0: i32) -> (i32, i32) {
    %c0_i32 = arith.constant 0 : i32
    %c0_i32_0 = arith.constant 0 : i32
    %c0_i32_1 = arith.constant 0 : i32
    return %c0_i32, %c0_i32_0 : i32, i32
  }
  func.func @transform_9(%arg0: i32) -> (i32, i32) {
    %c0_i32 = arith.constant 0 : i32
    %c0_i32_0 = arith.constant 0 : i32
    return %arg0, %c0_i32 : i32, i32
  }
}

</mosaic_0001>

<bundles_post_ra>
// kernel: tpu_custom_call.1
= control target key start
LH: loop header
LB: loop body
LE: loop exit
PB: predicated region body
PF: predicated region fallthrough
CT: control target
= control target key end

     0   :  { %14 = vsyncpa [#allocation3], 0  ;;  %s812_s0 = inlined_call_operand.hbm [shape: f32[8,16], index: 0, kind: input, shape index: {}]   ;;  %s813_s1 = inlined_call_operand.hbm [shape: bf16[16,64], index: 1, kind: input, shape index: {}]   ;;  %s814_s2 = inlined_call_operand.vmem [shape: f32[1,64], index: 2, kind: input, shape index: {}]   ;;  %s815_s3 = inlined_call_operand.hbm [shape: bf16[64,64], index: 3, kind: input, shape index: {}]   ;;  %s816_s4 = inlined_call_operand.vmem [shape: f32[1,64], index: 4, kind: input, shape index: {}]   ;;  %s817_s5 = inlined_call_operand.hbm [shape: bf16[64,64], index: 5, kind: input, shape index: {}]   ;;  %s818_s6 = inlined_call_operand.vmem [shape: f32[1,64], index: 6, kind: input, shape index: {}]   ;;  %s819_s7 = inlined_call_operand.hbm [shape: bf16[64,128], index: 7, kind: input, shape index: {}]   ;;  %s820_s8 = inlined_call_operand.vmem [shape: f32[1,128], index: 8, kind: input, shape index: {}]   ;;  %s821_s9 = inlined_call_operand.hbm [shape: f32[8,128], index: 9, kind: output, shape index: {}]  }
   0x1   :  { %15 = vsyncpa [#allocation6], 0 }
   0x2   :  { %16 = vsyncpa [#allocation9], 0 }
   0x3   :  { %17 = vsyncpa [#allocation4], 0  ;;  %s686_s30 = smov [#allocation5]  }
   0x4   :  { %s33_s10 = sshll.u32 %s686_s30, 4  ;;  %s34_s10 = int_to_ptr.vmem [resolvable:$true] %s33_s10 }
   0x5   :  { %s566_s11 = scalar_lea.vmem %s34_s10, 128  ;;  %p571_p1 = scmp.lt.s32.totalorder %s34_s10, %s34_s10 }
   0x6   :  { %p567_p0 = scmp.ne.s32.totalorder %s34_s10, %s566_s11  ;;  %p572_p2 = scmp.lt.s32.totalorder %s566_s11, %s566_s11 }
   0x8   :  { %p573_p3 = por %p572_p2, %p571_p1 }
   0xa   :  { %p574_p4 = pnand %p573_p3, %p567_p0 }
   0xc   :  { %577 = shalt.err (!%p574_p4)
}
   0xd   :  { %s687_s12 = smov 64   ;;  %s688_s13 = smov 4  }
   0xe   :  { %39 = dma.hbm_to_vmem [thread:$0]  %s813_s1, 128, %s34_s10, [#allocation6], %s687_s12, %s687_s12, %s688_s13  }
   0xf   :  { %s689_s16 = smov [#allocation8]   ;;  %s690_s18 = smov [#allocation2]  }
  0x10   :  { %s61_s17 = sshll.u32 %s689_s16, 4  ;;  %s24_s19 = sshll.u32 %s690_s18, 4  ;;  %s62_s17 = int_to_ptr.vmem [resolvable:$true] %s61_s17  ;;  %s25_s19 = int_to_ptr.vmem [resolvable:$true] %s24_s19 }
  0x11   :  { %s586_s20 = scalar_lea.vmem %s62_s17, 512  ;;  %p591_p6 = scmp.lt.s32.totalorder %s62_s17, %s62_s17 }
  0x12   :  { %p587_p5 = scmp.ne.s32.totalorder %s62_s17, %s586_s20  ;;  %p592_p7 = scmp.lt.s32.totalorder %s586_s20, %s586_s20 }
  0x14   :  { %p593_p8 = por %p592_p7, %p591_p6 }
  0x16   :  { %p594_p9 = pnand %p593_p8, %p587_p5 }
  0x18   :  { %597 = shalt.err (!%p594_p9)
}
  0x19   :  { %67 = dma.hbm_to_vmem [thread:$0]  %s817_s5, 512, %s62_s17, [#allocation9], %s687_s12, %s687_s12, %s688_s13  }
  0x1a   :  { %s606_s1 = scalar_lea.vmem %s25_s19, 128  ;;  %p611_p11 = scmp.lt.s32.totalorder %s25_s19, %s25_s19 }
  0x1b   :  { %p607_p10 = scmp.ne.s32.totalorder %s25_s19, %s606_s1  ;;  %p612_p12 = scmp.lt.s32.totalorder %s606_s1, %s606_s1 }
  0x1d   :  { %p613_p13 = por %p612_p12, %p611_p11 }
  0x1f   :  { %p614_p0 = pnand %p613_p13, %p607_p10 }
  0x21   :  { %617 = shalt.err (!%p614_p0)
}
  0x22   :  { %27 = dma.hbm_to_vmem [thread:$0]  %s812_s0, 128, %s25_s19, [#allocation3]  }
  0x23   :  { %s691_s25 = smov [#allocation7]   ;;  %s692_s27 = smov [#allocation10]  }
  0x24   :  { %s47_s26 = sshll.u32 %s691_s25, 4  ;;  %s75_s28 = sshll.u32 %s692_s27, 4  ;;  %s48_s26 = int_to_ptr.vmem [resolvable:$true] %s47_s26  ;;  %s76_s28 = int_to_ptr.vmem [resolvable:$true] %s75_s28 }
  0x25   :  { %s626_s29 = scalar_lea.vmem %s48_s26, 512  ;;  %p631_p2 = scmp.lt.s32.totalorder %s48_s26, %s48_s26 }
  0x26   :  { %p627_p1 = scmp.ne.s32.totalorder %s48_s26, %s626_s29  ;;  %p632_p3 = scmp.lt.s32.totalorder %s626_s29, %s626_s29 }
  0x28   :  { %p633_p4 = por %p632_p3, %p631_p2 }
  0x2a   :  { %p634_p5 = pnand %p633_p4, %p627_p1 }
  0x2c   :  { %637 = shalt.err (!%p634_p5)
}
  0x2d   :  { %53 = dma.hbm_to_vmem [thread:$0]  %s815_s3, 512, %s48_s26, [#allocation6], %s687_s12, %s687_s12, %s688_s13  }
  0x2e   :  { %s646_s0 = scalar_lea.vmem %s76_s28, 512  ;;  %p651_p7 = scmp.lt.s32.totalorder %s76_s28, %s76_s28 }
  0x2f   :  { %p647_p6 = scmp.ne.s32.totalorder %s76_s28, %s646_s0  ;;  %p652_p8 = scmp.lt.s32.totalorder %s646_s0, %s646_s0 }
  0x31   :  { %p653_p9 = por %p652_p8, %p651_p7 }
  0x33   :  { %p654_p10 = pnand %p653_p9, %p647_p6 }
  0x35   :  { %657 = shalt.err (!%p654_p10)
}
  0x36   :  { %81 = dma.hbm_to_vmem [thread:$0]  %s819_s7, 512, %s76_s28, [#allocation9], %s687_s12, %s687_s12, %s688_s13  }
  0x37   :  { %678 = dma.done.wait [#allocation3], 128  }
  0x38   :  { %679 = vsyncadd [#allocation3], 4294967168 }
  0x39   :  { %680 = dma.done.wait [#allocation6], 640  }
  0x3a   :  { %681 = vsyncadd [#allocation6], 4294966656 }
  0x3b   :  { %682 = dma.done.wait [#allocation9], 1024  }
  0x3c   :  { %683 = vsyncadd [#allocation9], 4294966272  ;;  %v693_v0 = vmov 0.0   ;;  %vm694_vm0 = vmmov 0   ;;  %v535_v1 = vld [vmem:[#allocation5] sm:$0xff]   ;;  %v100_v2 = vld [vmem:[#allocation2] sm:$0xff]  ;;  %v414_v40 = vlaneseq }
  0x3d   :  { %483 = vmatprep.subr.bf16.mxu0 %v693_v0  ;;  %485 = vmatprep.mubr.msk.bf16.mxu0 %vm694_vm0, %v693_v0  ;;  %vm117_vm1 = vcmask 130048   ;;  %v101_v3 = vpack.c.bf16 %v100_v2, %v100_v2  ;;  %v536_v4 = vld [vmem:[#allocation7 + $0x18] sm:$0xff]   ;;  %v537_v5 = vld [vmem:[#allocation7 + $0x10] sm:$0xff]   ;;  %v538_v6 = vld [vmem:[#allocation7 + $0x8] sm:$0xff]   ;;  %vm202_vm2 = vcmask 523264  }
  0x3e   :  { %489 = vmatprep.subr.bf16.mxu1 %v693_v0  ;;  %497 = vmatprep.mubr.msk.bf16.mxu1 %vm694_vm0, %v693_v0  ;;  %v539_v7 = vld [vmem:[#allocation7] sm:$0xff]   ;;  %v445_v8 = vld [vmem:[%s814_s2] ss:$0 sm:$0xff]  ;;  %v540_v16 = vld [vmem:[#allocation8 + $0x18] sm:$0xff]   ;;  %v415_v41 = vand.u32 127, %v414_v40 }
  0x3f   :  { %484 = vmatpush3.bf16.msra.mxu0 %v535_v1  ;;  %490 = vmatpush3.bf16.msra.mxu1 %v536_v4  ;;  %v541_v17 = vld [vmem:[#allocation8 + $0x10] sm:$0xff]   ;;  %v542_v18 = vld [vmem:[#allocation8 + $0x8] sm:$0xff]   ;;  %v543_v19 = vld [vmem:[#allocation8] sm:$0xff]  }
  0x40   :  { %501 = vmatprep.subr.bf16.mxu0 %v693_v0  ;;  %491 = vmatprep.subr.bf16.mxu1 %v693_v0  ;;  %v448_v20 = vld [vmem:[%s816_s4] ss:$0 sm:$0xff]  ;;  %v544_v28 = vld [vmem:[#allocation10 + $0x18] sm:$0xff]   ;;  %v546_v30 = vld [vmem:[#allocation10 + $0x8] sm:$0xff]   ;;  %vm416_vm3 = vcmp.lt.s32.totalorder %v415_v41, 4 }
  0x41   :  { %v545_v29 = vld [vmem:[#allocation10 + $0x10] sm:$0xff]   ;;  %v547_v31 = vld [vmem:[#allocation10] sm:$0xff]  }
  0x42   :  { %486 = vmatmul.mubr.msk.bf16.vlgmr.msra.gmra.mxu0 %vm117_vm1, %v101_v3  ;;  %v454_v32 = vld [vmem:[%s818_s6] ss:$0 sm:$0xff]  ;;  %s695_s6 = smov [#allocation11]  }
  0x43   :  { %509 = vmatprep.mubr.msk.bf16.mxu0 %vm694_vm0, %v693_v0  ;;  %492 = vmatpush3.bf16.msra.mxu1 %v537_v5  ;;  %v460_v42 = vld [vmem:[%s820_s8] ss:$0 sm:$0xff]  ;;  %s434_s16 = sshll.u32 %s695_s6, 4  ;;  %s435_s16 = int_to_ptr.vmem [resolvable:$true] %s434_s16 }
  0x44   :  { %493 = vmatprep.subr.bf16.mxu1 %v693_v0  ;;  %502 = vmatpush3.bf16.msra.mxu0 %v540_v16  ;;  %s658_s8 = scalar_lea.vmem %s435_s16, 128  ;;  %p663_p12 = scmp.lt.s32.totalorder %s435_s16, %s435_s16 }
  0x45   :  { %503 = vmatprep.subr.bf16.mxu0 %v693_v0  ;;  %p659_p11 = scmp.ne.s32.totalorder %s435_s16, %s658_s8  ;;  %p664_p13 = scmp.lt.s32.totalorder %s658_s8, %s658_s8 }
  0x47   :  { %494 = vmatpush3.bf16.msra.mxu1 %v538_v6  ;;  %p665_p0 = por %p664_p13, %p663_p12 }
  0x48   :  { %495 = vmatprep.subr.bf16.mxu1 %v693_v0  ;;  %504 = vmatpush3.bf16.msra.mxu0 %v541_v17 }
  0x49   :  { %505 = vmatprep.subr.bf16.mxu0 %v693_v0  ;;  %p666_p1 = pnand %p665_p0, %p659_p11 }
  0x4b   :  { %496 = vmatpush3.bf16.msra.mxu1 %v539_v7 }
  0x4c   :  { %513 = vmatprep.subr.bf16.mxu1 %v693_v0  ;;  %506 = vmatpush3.bf16.msra.mxu0 %v542_v18 }
  0x4d   :  { %507 = vmatprep.subr.bf16.mxu0 %v693_v0 }
  0x50   :  { %508 = vmatpush3.bf16.msra.mxu0 %v543_v19 }
 0x102   :  { %v155_v9 = vpop.f32.mrf.mxu0 }
 0x103   :  { %v156_v10 = vadd.f32 %v445_v8, %v155_v9 }
 0x104   :  { %v487_v11 = vpop.f32.mrf.mxu0 }
 0x105   :  { %548 = vtanh.f32 %v156_v10 }
 0x106   :  { %v158_v12 = vpop.f32.mrf.mxu0 }
 0x108   :  { %v488_v13 = vpop.f32.mrf.mxu0 }
 0x112   :  { %v549_v14 = vpop.eup %548 }
 0x113   :  { %v162_v15 = vpack.c.bf16 %v549_v14, %v549_v14 }
 0x115   :  { %498 = vmatmul.mubr.msk.bf16.vlgmr.msra.gmra.mxu1 %vm202_vm2, %v162_v15 }
 0x116   :  { %521 = vmatprep.mubr.msk.bf16.mxu1 %vm694_vm0, %v693_v0  ;;  %514 = vmatpush3.bf16.msra.mxu1 %v544_v28 }
 0x117   :  { %515 = vmatprep.subr.bf16.mxu1 %v693_v0 }
 0x11a   :  { %516 = vmatpush3.bf16.msra.mxu1 %v545_v29 }
 0x11b   :  { %517 = vmatprep.subr.bf16.mxu1 %v693_v0 }
 0x11e   :  { %518 = vmatpush3.bf16.msra.mxu1 %v546_v30 }
 0x11f   :  { %519 = vmatprep.subr.bf16.mxu1 %v693_v0 }
 0x122   :  { %520 = vmatpush3.bf16.msra.mxu1 %v547_v31 }
 0x1d5   :  { %v240_v21 = vpop.f32.mrf.mxu1 }
 0x1d6   :  { %v241_v22 = vadd.f32 %v448_v20, %v240_v21 }
 0x1d7   :  { %v499_v23 = vpop.f32.mrf.mxu1 }
 0x1d8   :  { %550 = vtanh.f32 %v241_v22 }
 0x1d9   :  { %v243_v24 = vpop.f32.mrf.mxu1 }
 0x1db   :  { %v500_v25 = vpop.f32.mrf.mxu1 }
 0x1e5   :  { %v551_v26 = vpop.eup %550 }
 0x1e6   :  { %v247_v27 = vpack.c.bf16 %v551_v26, %v551_v26 }
 0x1e8   :  { %510 = vmatmul.mubr.msk.bf16.vlgmr.msra.gmra.mxu0 %vm202_vm2, %v247_v27 }
 0x2a8   :  { %v324_v33 = vpop.f32.mrf.mxu0 }
 0x2a9   :  { %v325_v34 = vadd.f32 %v454_v32, %v324_v33 }
 0x2aa   :  { %v511_v35 = vpop.f32.mrf.mxu0 }
 0x2ab   :  { %552 = vtanh.f32 %v325_v34 }
 0x2ac   :  { %v327_v36 = vpop.f32.mrf.mxu0 }
 0x2ae   :  { %v512_v37 = vpop.f32.mrf.mxu0 }
 0x2b8   :  { %v553_v38 = vpop.eup %552 }
 0x2b9   :  { %v331_v39 = vpack.c.bf16 %v553_v38, %v553_v38 }
 0x2bb   :  { %522 = vmatmul.mubr.msk.bf16.vlgmr.msra.gmra.mxu1 %vm202_vm2, %v331_v39 }
 0x37b   :  { %v408_v43 = vpop.f32.mrf.mxu1 }
 0x37c   :  { %v409_v44 = vadd.f32 %v460_v42, %v408_v43 }
 0x37d   :  { %v523_v45 = vpop.f32.mrf.mxu1 }
 0x37e   :  { %v417_v46 = vsel %vm416_vm3, %v409_v44, -1e+30 }
 0x37f   :  { %418 = vmax.xlane.f32.xlu0 %v417_v46  ;;  %v411_v47 = vpop.f32.mrf.mxu1 }
 0x381   :  { %v524_v48 = vpop.f32.mrf.mxu1 }
 0x408   :  { %v419_v49 = vpop.xlane.xlu0 %418 }
 0x409   :  { %v420_v50 = vsub.f32 %v417_v46, %v419_v49 }
 0x40b   :  { %v421_v51 = vmul.f32 1.442695, %v420_v50 }
 0x40d   :  { %554 = vpow2.f32 %v421_v51 }
 0x41a   :  { %v555_v52 = vpop.eup %554 }
 0x41b   :  { %423 = vadd.xlane.f32.xlu0 %v555_v52 }
 0x4a4   :  { %v424_v53 = vpop.xlane.xlu0 %423 }
 0x4a5   :  { %556 = vrcp.f32 %v424_v53 }
 0x4b2   :  { %v557_v54 = vpop.eup %556 }
 0x4b3   :  { %v426_v55 = vmul.f32 %v557_v54, %v555_v52 }
 0x4b5   :  { %427 = vst [vmem:[#allocation11] sm:$0xff] %v426_v55 }
 0x4b6   :  { %669 = shalt.err (!%p666_p1)
}
 0x4b7   :  { %437 = dma.vmem_to_hbm [thread:$0]  %s435_s16, 128, %s821_s9, [#allocation4]  }
 0x4b8   :  { %684 = dma.done.wait [#allocation4], 128  }
 0x4b9   :  { %685 = vsyncadd [#allocation4], 4294967168 }
 0x4ba   :  { %441 = vsyncpa [#allocation3], 1 }
 0x4bb   :  { %442 = vsyncpa [#allocation6], 1 }
 0x4bc   :  { %443 = vsyncpa [#allocation9], 1 }
 0x4bd   :  { %444 = vsyncpa [#allocation4], 1 }

</bundles_post_ra>
